<compile_context>
chip_gen: v6e
topology: v6e:2x2x1
jax: 0.10.0
libtpu: 0.0.40
codegen_flags: <defaults>
</compile_context>

<pallas_src>
import functools

import jax
import jax.numpy as jnp
from jax.experimental import pallas as pl
from jax.experimental.pallas import tpu as pltpu


def _round_up(x: int, m: int) -> int:
    return (x + m - 1) // m * m


def _cdiv(a: int, b: int) -> int:
    return -(-a // b)


def _row_sum_lanes_f32(x_ref, valid):
    """Row-sum of the current (r, m) block -> (r, 128) f32 (row sum broadcast
    to every lane), avoiding per-vreg XLU reduces.

    Full 128-lane groups are accumulated lane-wise on the VPU; the cross-lane
    contraction (and any <128-lane remainder) is one MXU dot with a ones
    matrix, which lands in the otherwise-idle vector-extended slot.
    `valid` (traced int or None) zeroes lanes >= valid (ragged reduction tail).
    """
    r, m = x_ref.shape
    groups, rem = divmod(m, 128)
    dnum = (((1,), (0,)), ((), ()))
    hi = jax.lax.Precision.HIGHEST  # keep ~f32 accuracy through the MXU
    total = None

    if groups:
        lanes = None
        acc = None
        for g in range(groups):
            sl = x_ref[:, g * 128:(g + 1) * 128].astype(jnp.float32)
            if valid is not None:
                if lanes is None:  # hoist the iota out of the unrolled loop
                    lanes = jax.lax.broadcasted_iota(jnp.int32, (r, 128), 1)
                sl = jnp.where(lanes + g * 128 < valid, sl, 0.0)
            acc = sl if acc is None else acc + sl
        total = jax.lax.dot_general(
            acc, jnp.ones((128, 128), jnp.float32), dnum,
            precision=hi, preferred_element_type=jnp.float32)

    if rem:
        tail = x_ref[:, groups * 128:].astype(jnp.float32)
        if valid is not None:
            lanes_t = jax.lax.broadcasted_iota(jnp.int32, (r, rem), 1)
            tail = jnp.where(lanes_t + groups * 128 < valid, tail, 0.0)
        t = jax.lax.dot_general(
            tail, jnp.ones((rem, 128), jnp.float32), dnum,
            precision=hi, preferred_element_type=jnp.float32)
        total = t if total is None else total + t

    return total


def _gap_single_kernel(x_ref, o_ref, *, inv_hw):
    # Whole H*W fits in one block: no scratch, no init/finalize phases.
    s = _row_sum_lanes_f32(x_ref, None)              # (tile_r, 128) f32
    o_ref[...] = (s[:, :1] * inv_hw).astype(o_ref.dtype)


def _gap_multi_kernel(x_ref, o_ref, acc_ref, *, inv_hw, hw, tile_hw, ragged):
    k = pl.program_id(1)

    @pl.when(k == 0)
    def _():
        acc_ref[...] = jnp.zeros_like(acc_ref)

    # Only the last chunk can be ragged; for earlier chunks valid >= tile_hw
    # so the mask is a no-op (and it is skipped entirely when hw % tile_hw == 0).
    valid = (hw - k * tile_hw) if ragged else None
    acc_ref[...] += _row_sum_lanes_f32(x_ref, valid)

    @pl.when(k == pl.num_programs(1) - 1)
    def _():
        o_ref[...] = (acc_ref[:, :1] * inv_hw).astype(o_ref.dtype)


def global_avg_pool_2d(
    x: jax.Array,
    *,
    vmem_budget_bytes: int = 8 * 1024 * 1024,   # total footprint; safe on v5e/v6e/v7x
    max_tile_hw: int = 16 * 1024,
) -> jax.Array:
    """x: (N, C, H, W) -> (N, C, 1, 1), mean over H and W (matches F.avg_pool2d)."""
    n, c, h, w = x.shape
    rows, hw = n * c, h * w
    x2d = x.reshape(rows, hw)                   # metadata-only for contiguous NCHW
    dtype_bytes = jnp.dtype(x.dtype).itemsize
    sublane = max(8, 32 // dtype_bytes)         # f32: 8, bf16: 16, int8/fp8: 32

    # ---- spatial (reduction) tiling ----------------------------------------
    if hw <= max_tile_hw:
        tile_hw, k_steps, ragged = hw, 1, False  # full last dim: 128-exempt
    else:
        k_steps = _cdiv(hw, max_tile_hw)
        tile_hw = _round_up(_cdiv(hw, k_steps), 128)
        k_steps = _cdiv(hw, tile_hw)
        ragged = (hw % tile_hw) != 0

    # ---- row tiling: honest VMEM accounting --------------------------------
    # Per row: double-buffered input chunk (lane-padded), double-buffered
    # (tile_r, 1) output block (lane-padded to 128), plus the f32 accumulator
    # scratch for the multi-step path.
    per_row = (2 * _round_up(tile_hw, 128) * dtype_bytes
               + 2 * 128 * dtype_bytes)
    if k_steps > 1:
        per_row += 128 * 4
    tile_r = max(sublane, vmem_budget_bytes // per_row)
    # v7x has 2 TensorCores: keep >= 2 steps on the "parallel" row axis when possible.
    tile_r = min(tile_r, _round_up(_cdiv(rows, 2), sublane))
    tile_r = max(sublane, (tile_r // sublane) * sublane)   # dtype sublane packing
    tile_r = min(tile_r, _round_up(rows, 8))               # never taller than needed
    tile_r = max(8, (tile_r // 8) * 8)                     # legality: multiple of 8
    grid_rows = _cdiv(rows, tile_r)

    inv_hw = 1.0 / float(hw)
    cost = pl.CostEstimate(flops=2 * rows * hw, transcendentals=0,
                           bytes_accessed=rows * hw * dtype_bytes + rows * dtype_bytes)
    out_shape = jax.ShapeDtypeStruct((rows, 1), x.dtype)

    if k_steps == 1:
        out2d = pl.pallas_call(
            functools.partial(_gap_single_kernel, inv_hw=inv_hw),
            out_shape=out_shape,
            grid_spec=pltpu.PrefetchScalarGridSpec(
                num_scalar_prefetch=0,
                grid=(grid_rows,),
                in_specs=[pl.BlockSpec((tile_r, tile_hw), lambda i: (i, 0))],
                out_specs=pl.BlockSpec((tile_r, 1), lambda i: (i, 0)),
            ),
            compiler_params=pltpu.CompilerParams(
                dimension_semantics=("parallel",)),
            cost_estimate=cost,
        )(x2d)
    else:
        out2d = pl.pallas_call(
            functools.partial(_gap_multi_kernel, inv_hw=inv_hw, hw=hw,
                              tile_hw=tile_hw, ragged=ragged),
            out_shape=out_shape,
            grid_spec=pltpu.PrefetchScalarGridSpec(
                num_scalar_prefetch=0,
                grid=(grid_rows, k_steps),
                in_specs=[pl.BlockSpec((tile_r, tile_hw), lambda i, k: (i, k))],
                out_specs=pl.BlockSpec((tile_r, 1), lambda i, k: (i, 0)),
                scratch_shapes=[pltpu.VMEM((tile_r, 128), jnp.float32)],
            ),
            compiler_params=pltpu.CompilerParams(
                dimension_semantics=("parallel", "arbitrary")),
            cost_estimate=cost,
        )(x2d)

    return out2d.reshape(n, c, 1, 1)


if __name__ == "__main__":
    key = jax.random.PRNGKey(0)

    # 1) Small NCHW input consistent with the module's forward.
    x = jax.random.normal(key, (2, 4, 16, 16), dtype=jnp.float32)
    out = global_avg_pool_2d(x)
    jax.block_until_ready(out)
    ref = jnp.mean(x, axis=(2, 3), keepdims=True)
    assert out.shape == (2, 4, 1, 1), out.shape
    assert jnp.allclose(out, ref, atol=1e-5, rtol=1e-5)

    # 2) ResNet-style 7x7 (hw not a multiple of 128) and rows not a multiple of 8:
    #    exercises full-dim lane blocks + partial trailing row block (no padding).
    x2 = jax.random.normal(jax.random.PRNGKey(1), (3, 5, 7, 7), dtype=jnp.float32)
    out2 = global_avg_pool_2d(x2)
    jax.block_until_ready(out2)
    ref2 = jnp.mean(x2, axis=(2, 3), keepdims=True)
    assert out2.shape == (3, 5, 1, 1), out2.shape
    assert jnp.allclose(out2, ref2, atol=1e-5, rtol=1e-5)

    # 3) Force the multi-step K-tiled accumulator path (divisible chunks).
    x3 = jax.random.normal(jax.random.PRNGKey(2), (2, 4, 16, 24), dtype=jnp.float32)
    out3 = global_avg_pool_2d(x3, max_tile_hw=128)
    jax.block_until_ready(out3)
    ref3 = jnp.mean(x3, axis=(2, 3), keepdims=True)
    assert out3.shape == (2, 4, 1, 1), out3.shape
    assert jnp.allclose(out3, ref3, atol=1e-5, rtol=1e-5)

    # 4) Multi-step with a ragged last chunk (hw=170, tile_hw=128): exercises
    #    the in-kernel lane mask that replaced the jnp.pad pre-pass.
    x4 = jax.random.normal(jax.random.PRNGKey(3), (2, 3, 10, 17), dtype=jnp.float32)
    out4 = global_avg_pool_2d(x4, max_tile_hw=128)
    jax.block_until_ready(out4)
    ref4 = jnp.mean(x4, axis=(2, 3), keepdims=True)
    assert out4.shape == (2, 3, 1, 1), out4.shape
    assert jnp.allclose(out4, ref4, atol=1e-5, rtol=1e-5)

    # 5) bf16 path (16-sublane packing, bf16 -> f32 accumulate).
    x5 = jax.random.normal(jax.random.PRNGKey(4), (2, 4, 16, 16), dtype=jnp.bfloat16)
    out5 = global_avg_pool_2d(x5)
    jax.block_until_ready(out5)
    ref5 = jnp.mean(x5.astype(jnp.float32), axis=(2, 3), keepdims=True)
    assert out5.shape == (2, 4, 1, 1), out5.shape
    assert jnp.allclose(out5.astype(jnp.float32), ref5, atol=1e-2, rtol=1e-2)

    print("KERNEL_OK")
</pallas_src>

<mosaic_0001>
module attributes {stable_mosaic.version = 11 : i64} {
  func.func @_gap_single_kernel(%arg0: i32, %arg1: memref<8x256xf32, #tpu.memory_space<vmem>>, %arg2: memref<8x1xf32, #tpu.memory_space<vmem>>) attributes {dimension_semantics = [#tpu.dimension_semantics<parallel>], iteration_bounds = array<i64: 1>, scalar_prefetch = 0 : i64, scratch_operands = 0 : i64, tpu.core_type = #tpu.core_type<tc>, window_params = [{transform_indices = @transform_0, window_bounds = array<i64: 8, 256>}, {transform_indices = @transform_1, window_bounds = array<i64: 8, 1>}]} {
    %c0 = arith.constant 0 : index
    %c0_0 = arith.constant 0 : index
    %0 = vector.load %arg1[%c0, %c0_0] : memref<8x256xf32, #tpu.memory_space<vmem>>, vector<8x128xf32>
    %c0_1 = arith.constant 0 : index
    %c128 = arith.constant 128 : index
    %1 = vector.load %arg1[%c0_1, %c128] : memref<8x256xf32, #tpu.memory_space<vmem>>, vector<8x128xf32>
    %2 = arith.addf %0, %1 : vector<8x128xf32>
    %cst = arith.constant 1.000000e+00 : f32
    %3 = vector.broadcast %cst : f32 to vector<128x128xf32>
    %cst_2 = arith.constant dense<0.000000e+00> : vector<8x128xf32>
    %4 = tpu.matmul %2, %3, %cst_2 {dimension_numbers = #tpu.dot_dimension_numbers<[1], [0], [0], [1], [0, 0, 1, 1], [], []>, precision = #tpu.contract_precision<fp32>} : vector<8x128xf32>, vector<128x128xf32>, vector<8x128xf32> -> vector<8x128xf32>
    %5 = vector.extract_strided_slice %4 {offsets = [0, 0], sizes = [8, 1], strides = [1, 1]} : vector<8x128xf32> to vector<8x1xf32>
    %cst_3 = arith.constant 3.906250e-03 : f32
    %6 = vector.broadcast %cst_3 : f32 to vector<8x1xf32>
    %7 = arith.mulf %5, %6 : vector<8x1xf32>
    %c0_4 = arith.constant 0 : index
    %c0_5 = arith.constant 0 : index
    %8 = vector.load %arg2[%c0_4, %c0_5] : memref<8x1xf32, #tpu.memory_space<vmem>>, vector<8x1xf32>
    tpu.vector_store %arg2[%c0_4, %c0_5], %7 {strides = array<i32>} : memref<8x1xf32, #tpu.memory_space<vmem>>, vector<8x1xf32>,
    return
  }
  func.func @transform_0(%arg0: i32) -> (i32, i32) {
    %c0_i32 = arith.constant 0 : i32
    %c0_i32_0 = arith.constant 0 : i32
    return %arg0, %c0_i32 : i32, i32
  }
  func.func @transform_1(%arg0: i32) -> (i32, i32) {
    %c0_i32 = arith.constant 0 : i32
    %c0_i32_0 = arith.constant 0 : i32
    return %arg0, %c0_i32 : i32, i32
  }
}

</mosaic_0001>

<bundles_post_ra>
// kernel: tpu_custom_call.1
= control target key start
LH: loop header
LB: loop body
LE: loop exit
PB: predicated region body
PF: predicated region fallthrough
CT: control target
= control target key end

     0   :  { %6 = vsyncpa [#allocation3], 0  ;;  %s667_s6 = smov [#allocation2]   ;;  %s812_s0 = inlined_call_operand.hbm [shape: f32[8,256], index: 0, kind: input, shape index: {}]   ;;  %s813_s1 = inlined_call_operand.vmem [shape: f32[8,1], index: 1, kind: output, shape index: {}]  }
   0x1   :  { %s13_s7 = sshll.u32 %s667_s6, 4  ;;  %s14_s7 = int_to_ptr.vmem [resolvable:$true] %s13_s7 }
   0x2   :  { %s653_s8 = scalar_lea.vmem %s14_s7, 256  ;;  %p658_p1 = scmp.lt.s32.totalorder %s14_s7, %s14_s7 }
   0x3   :  { %p654_p0 = scmp.ne.s32.totalorder %s14_s7, %s653_s8  ;;  %p659_p2 = scmp.lt.s32.totalorder %s653_s8, %s653_s8 }
   0x5   :  { %p660_p3 = por %p659_p2, %p658_p1 }
   0x7   :  { %p661_p4 = pnand %p660_p3, %p654_p0 }
   0x9   :  { %664 = shalt.err (!%p661_p4)
}
   0xa   :  { %16 = dma.hbm_to_vmem [thread:$0]  %s812_s0, 256, %s14_s7, [#allocation3]  }
   0xb   :  { %665 = dma.done.wait [#allocation3], 256  }
   0xc   :  { %666 = vsyncadd [#allocation3], 4294967040  ;;  %v668_v0 = vmov 0.0   ;;  %v669_v1 = vmov 1.0   ;;  %vm670_vm0 = vmmov 0   ;;  %v20_v2 = vld [vmem:[#allocation2] sm:$0xff] }
   0xd   :  { %521 = vmatprep.subr.mxu0 %v668_v0  ;;  %556 = vmatprep.subr.mxu1 %v668_v0  ;;  %v21_v3 = vld [vmem:[#allocation2 + $0x8] sm:$0xff]  ;;  %vm457_vm1 = vcmask 7168  }
   0xe   :  { %522 = vmatpush3.msra.mxu0 %v669_v1  ;;  %557 = vmatpush3.msra.mxu1 %v668_v0  ;;  %v22_v4 = vadd.f32 %v21_v3, %v20_v2 }
   0xf   :  { %523 = vmatprep.subr.mxu0 %v668_v0  ;;  %558 = vmatprep.mubr.msk.f32.mxu1 %vm670_vm0, %v668_v0 }
  0x10   :  { %524 = vmatpush3.msra.mxu0 %v669_v1  ;;  %561 = vmatprep.subr.mxu1 %v668_v0  ;;  %v701_v5 = vand.u32 4294901760, %v22_v4 }
  0x11   :  { %525 = vmatprep.subr.mxu0 %v668_v0  ;;  %553 = vmatprep.mubr.msk.f32.mxu0 %vm670_vm0, %v668_v0 }
  0x12   :  { %526 = vmatpush3.msra.mxu0 %v669_v1  ;;  %559 = vmatmul.mubr.f32.vlgmr.msra.gmra.mxu1 %v701_v5  ;;  %v707_v6 = vsub.f32 %v22_v4, %v701_v5 }
  0x13   :  { %527 = vmatprep.subr.mxu0 %v668_v0  ;;  %562 = vmatpush3.msra.mxu1 %v668_v0 }
  0x14   :  { %528 = vmatpush3.msra.mxu0 %v669_v1  ;;  %563 = vmatprep.mubr.msk.f32.mxu1 %vm670_vm0, %v668_v0  ;;  %v90_v7 = vand.u32 4294901760, %v707_v6 }
  0x15   :  { %529 = vmatprep.subr.mxu0 %v668_v0  ;;  %566 = vmatprep.subr.mxu1 %v668_v0 }
  0x16   :  { %530 = vmatpush3.msra.mxu0 %v669_v1  ;;  %564 = vmatmul.mubr.f32.vlgmr.msra.gmra.mxu1 %v707_v6  ;;  %v91_v8 = vsub.f32 %v707_v6, %v90_v7 }
  0x17   :  { %531 = vmatprep.subr.mxu0 %v668_v0  ;;  %567 = vmatpush3.msra.mxu1 %v669_v1 }
  0x18   :  { %532 = vmatpush3.msra.mxu0 %v669_v1  ;;  %568 = vmatprep.subr.mxu1 %v668_v0  ;;  %v92_v9 = vand.u32 4294901760, %v91_v8 }
  0x19   :  { %533 = vmatprep.subr.mxu0 %v668_v0  ;;  %569 = vmatpush3.msra.mxu1 %v669_v1 }
  0x1a   :  { %534 = vmatpush3.msra.mxu0 %v669_v1  ;;  %570 = vmatprep.subr.mxu1 %v668_v0 }
  0x1b   :  { %535 = vmatprep.subr.mxu0 %v668_v0  ;;  %571 = vmatpush3.msra.mxu1 %v669_v1 }
  0x1c   :  { %536 = vmatpush3.msra.mxu0 %v669_v1  ;;  %572 = vmatprep.subr.mxu1 %v668_v0 }
  0x1d   :  { %537 = vmatprep.subr.mxu0 %v668_v0  ;;  %573 = vmatpush3.msra.mxu1 %v669_v1 }
  0x1e   :  { %538 = vmatpush3.msra.mxu0 %v669_v1  ;;  %574 = vmatprep.subr.mxu1 %v668_v0 }
  0x1f   :  { %539 = vmatprep.subr.mxu0 %v668_v0  ;;  %575 = vmatpush3.msra.mxu1 %v669_v1 }
  0x20   :  { %540 = vmatpush3.msra.mxu0 %v669_v1  ;;  %576 = vmatprep.subr.mxu1 %v668_v0 }
  0x21   :  { %541 = vmatprep.subr.mxu0 %v668_v0  ;;  %577 = vmatpush3.msra.mxu1 %v669_v1 }
  0x22   :  { %542 = vmatpush3.msra.mxu0 %v669_v1  ;;  %578 = vmatprep.subr.mxu1 %v668_v0 }
  0x23   :  { %543 = vmatprep.subr.mxu0 %v668_v0  ;;  %579 = vmatpush3.msra.mxu1 %v669_v1 }
  0x24   :  { %544 = vmatpush3.msra.mxu0 %v669_v1  ;;  %580 = vmatprep.subr.mxu1 %v668_v0 }
  0x25   :  { %545 = vmatprep.subr.mxu0 %v668_v0  ;;  %581 = vmatpush3.msra.mxu1 %v669_v1 }
  0x26   :  { %546 = vmatpush3.msra.mxu0 %v669_v1  ;;  %582 = vmatprep.subr.mxu1 %v668_v0 }
  0x27   :  { %547 = vmatprep.subr.mxu0 %v668_v0  ;;  %583 = vmatpush3.msra.mxu1 %v669_v1 }
  0x28   :  { %548 = vmatpush3.msra.mxu0 %v669_v1  ;;  %584 = vmatprep.subr.mxu1 %v668_v0 }
  0x29   :  { %549 = vmatprep.subr.mxu0 %v668_v0  ;;  %585 = vmatpush3.msra.mxu1 %v669_v1 }
  0x2a   :  { %550 = vmatpush3.msra.mxu0 %v669_v1  ;;  %586 = vmatprep.subr.mxu1 %v668_v0 }
  0x2b   :  { %551 = vmatprep.subr.mxu0 %v668_v0  ;;  %587 = vmatpush3.msra.mxu1 %v669_v1 }
  0x2c   :  { %552 = vmatpush3.msra.mxu0 %v669_v1  ;;  %588 = vmatprep.subr.mxu1 %v668_v0 }
  0x2d   :  { %554 = vmatmul.mubr.f32.vlgmr.msra.gmra.mxu0 %v92_v9  ;;  %606 = vmatprep.subr.mxu0 %v668_v0 }
  0x2e   :  { %607 = vmatpush3.msra.mxu0 %v669_v1  ;;  %589 = vmatpush3.msra.mxu1 %v669_v1 }
  0x2f   :  { %608 = vmatprep.subr.mxu0 %v668_v0  ;;  %590 = vmatprep.subr.mxu1 %v668_v0 }
  0x30   :  { %609 = vmatpush3.msra.mxu0 %v669_v1  ;;  %591 = vmatpush3.msra.mxu1 %v669_v1 }
  0x31   :  { %610 = vmatprep.subr.mxu0 %v668_v0  ;;  %592 = vmatprep.subr.mxu1 %v668_v0 }
  0x32   :  { %611 = vmatpush3.msra.mxu0 %v669_v1  ;;  %593 = vmatpush3.msra.mxu1 %v669_v1 }
  0x33   :  { %612 = vmatprep.subr.mxu0 %v668_v0  ;;  %594 = vmatprep.subr.mxu1 %v668_v0 }
  0x34   :  { %613 = vmatpush3.msra.mxu0 %v669_v1  ;;  %595 = vmatpush3.msra.mxu1 %v669_v1 }
  0x35   :  { %614 = vmatprep.subr.mxu0 %v668_v0  ;;  %596 = vmatprep.subr.mxu1 %v668_v0 }
  0x36   :  { %615 = vmatpush3.msra.mxu0 %v669_v1  ;;  %597 = vmatpush3.msra.mxu1 %v669_v1 }
  0x37   :  { %616 = vmatprep.subr.mxu0 %v668_v0  ;;  %598 = vmatprep.mubr.msk.f32.mxu1 %vm670_vm0, %v668_v0 }
  0x38   :  { %617 = vmatpush3.msra.mxu0 %v669_v1  ;;  %599 = vmatmul.mubr.f32.vlgmr.msra.gmra.mxu1 %v90_v7 }
  0x39   :  { %618 = vmatprep.subr.mxu0 %v668_v0  ;;  %601 = vmatprep.subr.mxu1 %v668_v0 }
  0x3a   :  { %619 = vmatpush3.msra.mxu0 %v669_v1  ;;  %602 = vmatpush3.msra.mxu1 %v668_v0 }
  0x3b   :  { %620 = vmatprep.subr.mxu0 %v668_v0  ;;  %603 = vmatprep.mubr.msk.f32.mxu1 %vm670_vm0, %v668_v0 }
  0x3c   :  { %621 = vmatpush3.msra.mxu0 %v669_v1  ;;  %604 = vmatmul.mubr.f32.vlgmr.msra.gmra.mxu1 %v701_v5 }
  0x3d   :  { %622 = vmatprep.subr.mxu0 %v668_v0  ;;  %638 = vmatprep.mubr.msk.f32.mxu0 %vm670_vm0, %v668_v0 }
  0x3e   :  { %623 = vmatpush3.msra.mxu0 %v669_v1 }
  0x3f   :  { %624 = vmatprep.subr.mxu0 %v668_v0 }
  0x40   :  { %625 = vmatpush3.msra.mxu0 %v669_v1 }
  0x41   :  { %626 = vmatprep.subr.mxu0 %v668_v0 }
  0x42   :  { %627 = vmatpush3.msra.mxu0 %v669_v1 }
  0x43   :  { %628 = vmatprep.subr.mxu0 %v668_v0 }
  0x44   :  { %629 = vmatpush3.msra.mxu0 %v669_v1 }
  0x45   :  { %630 = vmatprep.subr.mxu0 %v668_v0 }
  0x46   :  { %631 = vmatpush3.msra.mxu0 %v669_v1 }
  0x47   :  { %632 = vmatprep.subr.mxu0 %v668_v0 }
  0x48   :  { %633 = vmatpush3.msra.mxu0 %v669_v1 }
  0x49   :  { %634 = vmatprep.subr.mxu0 %v668_v0 }
  0x4a   :  { %635 = vmatpush3.msra.mxu0 %v669_v1 }
  0x4b   :  { %636 = vmatprep.subr.mxu0 %v668_v0 }
  0x4c   :  { %637 = vmatpush3.msra.mxu0 %v669_v1 }
  0x4d   :  { %639 = vmatmul.mubr.f32.vlgmr.msra.gmra.mxu0 %v701_v5 }
  0xd2   :  { %v165_v10 = vpop.f32.mrf.mxu1 }
  0xd4   :  { %v560_v11 = vpop.f32.mrf.mxu1 }
  0xd6   :  { %v237_v12 = vpop.f32.mrf.mxu1 }
  0xd8   :  { %v565_v13 = vpop.f32.mrf.mxu1 }
  0xed   :  { %v94_v14 = vpop.f32.mrf.mxu0 }
  0xee   :  { %v166_v20 = vadd.f32 %v165_v10, %v94_v14 }
  0xef   :  { %v555_v15 = vpop.f32.mrf.mxu0 }
  0xf0   :  { %v238_v21 = vadd.f32 %v237_v12, %v166_v20 }
  0xf8   :  { %v310_v16 = vpop.f32.mrf.mxu1 }
  0xf9   :  { %v311_v22 = vadd.f32 %v310_v16, %v238_v21 }
  0xfa   :  { %v600_v17 = vpop.f32.mrf.mxu1 }
  0xfc   :  { %v381_v18 = vpop.f32.mrf.mxu1 }
  0xfd   :  { %v382_v23 = vadd.f32 %v381_v18, %v311_v22 }
  0xfe   :  { %v605_v19 = vpop.f32.mrf.mxu1 }
 0x10d   :  { %v452_v24 = vpop.f32.mrf.mxu0 }
 0x10e   :  { %v453_v25 = vadd.f32 %v452_v24, %v382_v23 }
 0x10f   :  { %v640_v26 = vpop.f32.mrf.mxu0 }
 0x110   :  { %v456_v27 = vmul.f32 0.00390625, %v453_v25 }
 0x112   :  { %458 = vst.msk [vmem:[%s813_s1] sm:$0xff] %vm457_vm1, %v456_v27 }
 0x113   :  { %463 = vsyncpa [#allocation3], 1 }

</bundles_post_ra>
